<compile_context>
chip_gen: v7x
topology: tpu7x:2x2x1
jax: 0.10.0
libtpu: 0.0.40
codegen_flags: <defaults>
</compile_context>

<pallas_src>
import functools
import math

import jax
import jax.numpy as jnp
from jax.experimental import pallas as pl
from jax.experimental.pallas import tpu as pltpu


_INV_SQRT2 = 1.0 / math.sqrt(2.0)


def _round_up(x, m):
    return ((x + m - 1) // m) * m


def _erf_approx(z):
    """Abramowitz & Stegun 7.1.26 erf approximation (kernel-only).

    The 1/(1+p|z|) divide is done as an EUP approximate reciprocal plus one
    Newton-Raphson refinement step: the estimate comes from the (otherwise
    idle) EUP slot and the refinement is 3 cheap VALU ops instead of a full
    f32 divide sequence.
    """
    a1 = 0.254829592
    a2 = -0.284496736
    a3 = 1.421413741
    a4 = -1.453152027
    a5 = 1.061405429
    p = 0.3275911
    s = jnp.where(z < 0.0, -1.0, 1.0).astype(z.dtype)
    az = jnp.abs(z)
    d = 1.0 + p * az
    t = pl.reciprocal(d, approx=True)       # EUP slot
    t = t * (2.0 - d * t)                   # one Newton step -> ~f32-exact
    poly = ((((a5 * t + a4) * t + a3) * t + a2) * t + a1) * t
    return s * (1.0 - poly * jnp.exp(-az * az))


def _apply_act(y, act):
    if act == "gelu":
        # x * 0.5 * (1 + erf(x/sqrt(2)))  with the 0.5 fused into the epilogue.
        return y * (0.5 + 0.5 * _erf_approx(y * _INV_SQRT2))
    if act == "relu":
        return jnp.maximum(y, 0.0)
    if act == "swish":
        return y * jax.nn.sigmoid(y)
    raise ValueError(f"unsupported hidden_act: {act}")


def _bert_intermediate_kernel(act, x_ref, w_ref, b_ref, o_ref):
    """One (tm, Ip) output row-tile.

    x_ref : (tm, H)   streamed row tile of flattened hidden states
    w_ref : (H, Ip)   full pre-transposed dense weight (VMEM resident)
    b_ref : (1, Ip)   full bias (VMEM resident)
    o_ref : (tm, Ip)  activated output tile
    """
    y = jnp.dot(x_ref[...], w_ref[...], preferred_element_type=jnp.float32)
    y = y + b_ref[...].astype(jnp.float32)
    o_ref[...] = _apply_act(y, act).astype(o_ref.dtype)


def bert_intermediate(hidden_states, w_t, bias, act="gelu", block_m=256):
    """act(hidden_states @ W^T + b).

    hidden_states: (..., H)
    w_t          : (H, I)  -- nn.Linear weight pre-transposed (hoisted once)
    bias         : (I,)
    Returns (..., I).
    """
    *lead, H = hidden_states.shape
    Hi, I = w_t.shape
    assert Hi == H, "weight/hidden size mismatch"

    M = 1
    for d in lead:
        M *= d
    x2d = hidden_states.reshape(M, H)

    itemsize = jnp.dtype(hidden_states.dtype).itemsize
    # Minimum useful sublane tile for packed dtypes (bf16: 16, 8-bit: 32).
    min_tm = 8 if itemsize >= 4 else (16 if itemsize == 2 else 32)

    # Row tile: large (amortizes ~0.35us/step, fills the MXU); pad M up to it.
    tm = block_m if M >= block_m else _round_up(M, min_tm)
    Mp = _round_up(M, tm)
    if Mp != M:
        x2d = jnp.pad(x2d, ((0, Mp - M), (0, 0)))

    # Lane-pad output columns to a multiple of 128 -> unmasked stores, no
    # MXU padding surprises.  Padded columns are sliced off below.
    Ip = _round_up(I, 128)
    if Ip != I:
        w_t = jnp.pad(w_t, ((0, 0), (0, Ip - I)))
        bias = jnp.pad(bias, (0, Ip - I))
    b2d = bias.reshape(1, Ip)

    # VMEM budget: resident weight + bias + double-buffered x / out tiles.
    vmem_bytes = (H * Ip * jnp.dtype(w_t.dtype).itemsize
                  + Ip * jnp.dtype(bias.dtype).itemsize
                  + 2 * tm * H * itemsize
                  + 2 * tm * Ip * itemsize)
    vmem_limit = min(64 << 20, max(32 << 20, int(vmem_bytes * 1.25) + (1 << 20)))

    kernel = functools.partial(_bert_intermediate_kernel, act)

    out2d = pl.pallas_call(
        kernel,
        out_shape=jax.ShapeDtypeStruct((Mp, Ip), hidden_states.dtype),
        grid=(Mp // tm,),
        in_specs=[
            pl.BlockSpec((tm, H), lambda i: (i, 0)),   # streamed activation rows
            pl.BlockSpec((H, Ip), lambda i: (0, 0)),   # weight: fetched once, resident
            pl.BlockSpec((1, Ip), lambda i: (0, 0)),   # bias: resident
        ],
        out_specs=pl.BlockSpec((tm, Ip), lambda i: (i, 0)),
        compiler_params=pltpu.CompilerParams(
            dimension_semantics=("parallel",),
            vmem_limit_bytes=vmem_limit),
    )(x2d, w_t, b2d)

    out = out2d[:M, :I]
    return out.reshape(*lead, I)


def reference_bert_intermediate(hidden_states, w, b, act="gelu"):
    """Pure-JAX reference mirroring the PyTorch forward (exact erf GELU).

    w is in PyTorch nn.Linear layout (out_features, in_features)."""
    y = hidden_states @ w.T + b
    if act == "gelu":
        return 0.5 * y * (1.0 + jax.lax.erf(y * _INV_SQRT2))
    if act == "relu":
        return jnp.maximum(y, 0.0)
    if act == "swish":
        return y * jax.nn.sigmoid(y)
    raise ValueError(act)


if __name__ == "__main__":
    # Small BERT-like config: hidden=32, intermediate=4*32=128, batch=2, seq=8.
    B, S, H = 2, 8, 32
    I = 4 * H

    key = jax.random.PRNGKey(0)
    k_x, k_w, k_b = jax.random.split(key, 3)

    hidden_states = jax.random.normal(k_x, (B, S, H), dtype=jnp.float32)
    # nn.Linear(H, I): weight (I, H), bias (I,) — PyTorch layout.
    w = 0.02 * jax.random.normal(k_w, (I, H), dtype=jnp.float32)
    b = 0.02 * jax.random.normal(k_b, (I,), dtype=jnp.float32)

    # Weight transpose hoisted out of the hot path: done once here.
    w_t = jnp.asarray(w.T)  # (H, I)

    out = bert_intermediate(hidden_states, w_t, b, act="gelu")
    out = jax.block_until_ready(out)

    ref = reference_bert_intermediate(hidden_states, w, b, act="gelu")
    assert out.shape == (B, S, I)
    err = float(jnp.max(jnp.abs(out - ref)))
    # Tolerance covers the A&S erf approximation (+ approx-recip w/ Newton step).
    assert err < 1e-4, f"mismatch vs reference: max abs err {err}"

    print("KERNEL_OK")
</pallas_src>

<mosaic_0001>
module attributes {stable_mosaic.version = 11 : i64} {
  func.func @_bert_intermediate_kernel(%arg0: i32, %arg1: memref<16x32xf32, #tpu.memory_space<vmem>>, %arg2: memref<32x128xf32, #tpu.memory_space<vmem>>, %arg3: memref<1x128xf32, #tpu.memory_space<vmem>>, %arg4: memref<16x128xf32, #tpu.memory_space<vmem>>) attributes {dimension_semantics = [#tpu.dimension_semantics<parallel>], iteration_bounds = array<i64: 1>, scalar_prefetch = 0 : i64, scratch_operands = 0 : i64, tpu.core_type = #tpu.core_type<tc>, window_params = [{transform_indices = @transform_0, window_bounds = array<i64: 16, 32>}, {pipeline_mode = #tpu.pipeline_mode<synchronous>, transform_indices = @transform_1, window_bounds = array<i64: 32, 128>}, {pipeline_mode = #tpu.pipeline_mode<synchronous>, transform_indices = @transform_2, window_bounds = array<i64: 1, 128>}, {transform_indices = @transform_3, window_bounds = array<i64: 16, 128>}]} {
    %c0 = arith.constant 0 : index
    %c0_0 = arith.constant 0 : index
    %0 = vector.load %arg1[%c0, %c0_0] : memref<16x32xf32, #tpu.memory_space<vmem>>, vector<16x32xf32>
    %c0_1 = arith.constant 0 : index
    %c0_2 = arith.constant 0 : index
    %1 = vector.load %arg2[%c0_1, %c0_2] : memref<32x128xf32, #tpu.memory_space<vmem>>, vector<32x128xf32>
    %cst = arith.constant dense<0.000000e+00> : vector<16x128xf32>
    %2 = tpu.matmul %0, %1, %cst {dimension_numbers = #tpu.dot_dimension_numbers<[1], [0], [0], [1], [0, 0, 1, 1], [], []>} : vector<16x32xf32>, vector<32x128xf32>, vector<16x128xf32> -> vector<16x128xf32>
    %c0_3 = arith.constant 0 : index
    %c0_4 = arith.constant 0 : index
    %3 = vector.load %arg3[%c0_3, %c0_4] : memref<1x128xf32, #tpu.memory_space<vmem>>, vector<1x128xf32>
    %4 = vector.broadcast %3 : vector<1x128xf32> to vector<16x128xf32>
    %5 = arith.addf %2, %4 : vector<16x128xf32>
    %cst_5 = arith.constant 0.707106769 : f32
    %6 = vector.broadcast %cst_5 : f32 to vector<16x128xf32>
    %7 = arith.mulf %5, %6 : vector<16x128xf32>
    %cst_6 = arith.constant 0.000000e+00 : f32
    %8 = vector.broadcast %cst_6 : f32 to vector<16x128xf32>
    %9 = arith.cmpf olt, %7, %8 : vector<16x128xf32>
    %cst_7 = arith.constant -1.000000e+00 : f32
    %cst_8 = arith.constant 1.000000e+00 : f32
    %10 = vector.broadcast %cst_7 : f32 to vector<16x128xf32>
    %11 = vector.broadcast %cst_8 : f32 to vector<16x128xf32>
    %12 = arith.select %9, %10, %11 : vector<16x128xi1>, vector<16x128xf32>
    %13 = math.absf %7 : vector<16x128xf32>
    %cst_9 = arith.constant 0.327591091 : f32
    %14 = vector.broadcast %cst_9 : f32 to vector<16x128xf32>
    %15 = arith.mulf %14, %13 : vector<16x128xf32>
    %cst_10 = arith.constant 1.000000e+00 : f32
    %16 = vector.broadcast %cst_10 : f32 to vector<16x128xf32>
    %17 = arith.addf %16, %15 : vector<16x128xf32>
    %18 = tpu.reciprocal %17 {approx = true} : vector<16x128xf32> -> vector<16x128xf32>
    %19 = arith.mulf %17, %18 : vector<16x128xf32>
    %cst_11 = arith.constant 2.000000e+00 : f32
    %20 = vector.broadcast %cst_11 : f32 to vector<16x128xf32>
    %21 = arith.subf %20, %19 : vector<16x128xf32>
    %22 = arith.mulf %18, %21 : vector<16x128xf32>
    %cst_12 = arith.constant 1.06140542 : f32
    %23 = vector.broadcast %cst_12 : f32 to vector<16x128xf32>
    %24 = arith.mulf %23, %22 : vector<16x128xf32>
    %cst_13 = arith.constant -1.45315206 : f32
    %25 = vector.broadcast %cst_13 : f32 to vector<16x128xf32>
    %26 = arith.addf %24, %25 : vector<16x128xf32>
    %27 = arith.mulf %26, %22 : vector<16x128xf32>
    %cst_14 = arith.constant 1.42141378 : f32
    %28 = vector.broadcast %cst_14 : f32 to vector<16x128xf32>
    %29 = arith.addf %27, %28 : vector<16x128xf32>
    %30 = arith.mulf %29, %22 : vector<16x128xf32>
    %cst_15 = arith.constant -0.284496725 : f32
    %31 = vector.broadcast %cst_15 : f32 to vector<16x128xf32>
    %32 = arith.addf %30, %31 : vector<16x128xf32>
    %33 = arith.mulf %32, %22 : vector<16x128xf32>
    %cst_16 = arith.constant 0.254829586 : f32
    %34 = vector.broadcast %cst_16 : f32 to vector<16x128xf32>
    %35 = arith.addf %33, %34 : vector<16x128xf32>
    %36 = arith.mulf %35, %22 : vector<16x128xf32>
    %cst_17 = arith.constant 0.000000e+00 : f32
    %37 = vector.broadcast %cst_17 : f32 to vector<16x128xf32>
    %38 = arith.subf %37, %13 : vector<16x128xf32>
    %39 = arith.mulf %38, %13 : vector<16x128xf32>
    %40 = math.exp %39 : vector<16x128xf32>
    %41 = arith.mulf %36, %40 : vector<16x128xf32>
    %cst_18 = arith.constant 1.000000e+00 : f32
    %42 = vector.broadcast %cst_18 : f32 to vector<16x128xf32>
    %43 = arith.subf %42, %41 : vector<16x128xf32>
    %44 = arith.mulf %12, %43 : vector<16x128xf32>
    %cst_19 = arith.constant 5.000000e-01 : f32
    %45 = vector.broadcast %cst_19 : f32 to vector<16x128xf32>
    %46 = arith.mulf %45, %44 : vector<16x128xf32>
    %cst_20 = arith.constant 5.000000e-01 : f32
    %47 = vector.broadcast %cst_20 : f32 to vector<16x128xf32>
    %48 = arith.addf %47, %46 : vector<16x128xf32>
    %49 = arith.mulf %5, %48 : vector<16x128xf32>
    %c0_21 = arith.constant 0 : index
    %c0_22 = arith.constant 0 : index
    %50 = vector.load %arg4[%c0_21, %c0_22] : memref<16x128xf32, #tpu.memory_space<vmem>>, vector<16x128xf32>
    tpu.vector_store %arg4[%c0_21, %c0_22], %49 {strides = array<i32>} : memref<16x128xf32, #tpu.memory_space<vmem>>, vector<16x128xf32>,
    return
  }
  func.func @transform_0(%arg0: i32) -> (i32, i32) {
    %c0_i32 = arith.constant 0 : i32
    %c0_i32_0 = arith.constant 0 : i32
    return %arg0, %c0_i32 : i32, i32
  }
  func.func @transform_1(%arg0: i32) -> (i32, i32) {
    %c0_i32 = arith.constant 0 : i32
    %c0_i32_0 = arith.constant 0 : i32
    %c0_i32_1 = arith.constant 0 : i32
    return %c0_i32, %c0_i32_0 : i32, i32
  }
  func.func @transform_2(%arg0: i32) -> (i32, i32) {
    %c0_i32 = arith.constant 0 : i32
    %c0_i32_0 = arith.constant 0 : i32
    %c0_i32_1 = arith.constant 0 : i32
    return %c0_i32, %c0_i32_0 : i32, i32
  }
  func.func @transform_3(%arg0: i32) -> (i32, i32) {
    %c0_i32 = arith.constant 0 : i32
    %c0_i32_0 = arith.constant 0 : i32
    return %arg0, %c0_i32 : i32, i32
  }
}

</mosaic_0001>

<bundles_post_ra>
// kernel: tpu_custom_call.1
= control target key start
LH: loop header
LB: loop body
LE: loop exit
PB: predicated region body
PF: predicated region fallthrough
CT: control target
= control target key end

     0   :  { %8 = vsyncpa [#allocation3], 0  ;;  %s412_s0 = inlined_call_operand.hbm [shape: f32[16,32], index: 0, kind: input, shape index: {}]   ;;  %s413_s1 = inlined_call_operand.hbm [shape: f32[32,128], index: 1, kind: input, shape index: {}]   ;;  %s414_s2 = inlined_call_operand.vmem [shape: f32[1,128], index: 2, kind: input, shape index: {}]   ;;  %s415_s3 = inlined_call_operand.hbm [shape: f32[16,128], index: 3, kind: output, shape index: {}]  }
   0x1   :  { %9 = vsyncpa [#allocation6], 0 }
   0x2   :  { %10 = vsyncpa [#allocation4], 0  ;;  %s330_s12 = smov [#allocation2]   ;;  %s258_s16 = scalar_lea.hbm %s412_s0, 256 }
   0x3   :  { %s16_s13 = sshll.u32 %s330_s12, 4  ;;  %p259_p0 = scmp.ne.s32.totalorder %s412_s0, %s258_s16  ;;  %s17_s13 = int_to_ptr.vmem [resolvable:$true] %s16_s13 }
   0x4   :  { %p262_p1 = scmp.lt.u32.totalorder %s258_s16, %s412_s0 }
   0x6   :  { %p264_p2 = pnand %p262_p1, %p259_p0 }
   0x8   :  { %267 = shalt.err (!%p264_p2)
}
   0x9   :  { %s268_s21 = scalar_lea.vmem %s17_s13, 256  ;;  %p273_p4 = scmp.lt.s32.totalorder %s17_s13, %s17_s13 }
   0xa   :  { %p269_p3 = scmp.ne.s32.totalorder %s17_s13, %s268_s21  ;;  %p274_p5 = scmp.lt.s32.totalorder %s268_s21, %s268_s21 }
   0xc   :  { %p275_p6 = por %p274_p5, %p273_p4 }
   0xe   :  { %p276_p7 = pnand %p275_p6, %p269_p3 }
  0x10   :  { %279 = shalt.err (!%p276_p7)
}
  0x11   :  { %s331_s22 = smov 128   ;;  %s332_s23 = smov 8  }
  0x12   :  { %22 = dma.hbm_to_vmem [thread:$0]  %s412_s0, 256, %s17_s13, [#allocation3], %s331_s22, %s331_s22, %s332_s23  }
  0x13   :  { %s333_s26 = smov [#allocation5]   ;;  %s280_s30 = scalar_lea.hbm %s413_s1, 512 }
  0x14   :  { %s28_s27 = sshll.u32 %s333_s26, 4  ;;  %p281_p8 = scmp.ne.s32.totalorder %s413_s1, %s280_s30  ;;  %s29_s27 = int_to_ptr.vmem [resolvable:$true] %s28_s27 }
  0x15   :  { %p284_p9 = scmp.lt.u32.totalorder %s280_s30, %s413_s1 }
  0x17   :  { %p286_p10 = pnand %p284_p9, %p281_p8 }
  0x19   :  { %289 = shalt.err (!%p286_p10)
}
  0x1a   :  { %s290_s8 = scalar_lea.vmem %s29_s27, 512  ;;  %p295_p12 = scmp.lt.s32.totalorder %s29_s27, %s29_s27 }
  0x1b   :  { %p291_p11 = scmp.ne.s32.totalorder %s29_s27, %s290_s8  ;;  %p296_p13 = scmp.lt.s32.totalorder %s290_s8, %s290_s8 }
  0x1d   :  { %p297_p0 = por %p296_p13, %p295_p12 }
  0x1f   :  { %p298_p1 = pnand %p297_p0, %p291_p11 }
  0x21   :  { %301 = shalt.err (!%p298_p1)
}
  0x22   :  { %34 = dma.hbm_to_vmem [thread:$0]  %s413_s1, 512, %s29_s27, [#allocation6], %s331_s22, %s331_s22, %s332_s23  }
  0x23   :  { %324 = dma.done.wait [#allocation3], 256  }
  0x24   :  { %325 = vsyncadd [#allocation3], 4294967040 }
  0x25   :  { %326 = dma.done.wait [#allocation6], 512  }
  0x26   :  { %327 = vsyncadd [#allocation6], 4294966784  ;;  %vm56_vm0 = vcmask 261120   ;;  %v45_v0 = vld [vmem:[#allocation5] sm:$0xff]  ;;  %v46_v1 = vld [vmem:[#allocation5 + $0x8] sm:$0xff]  ;;  %v334_v58 = vmov 1.0  }
  0x27   :  { %v47_v2 = vld [vmem:[#allocation5 + $0x10] sm:$0xff]  ;;  %v236_v3 = vpack.c.bf16 %v46_v1, %v45_v0  ;;  %v48_v4 = vld [vmem:[#allocation5 + $0x18] sm:$0xff] }
  0x28   :  { %v43_v5 = vld [vmem:[#allocation2] sm:$0xff]  ;;  %v240_v6 = vpack.c.bf16 %v48_v4, %v47_v2  ;;  %v44_v7 = vld [vmem:[#allocation2 + $0x8] sm:$0xff] }
  0x29   :  { %233 = vmatprep.mubr.msk.f32.mxu0 %vm56_vm0, %v43_v5  ;;  %237 = vmatprep.subr.bf16.mxu0 %v236_v3  ;;  %v216_v8 = vld [vmem:[%s414_s2] ss:$0 sm:$0xff]  ;;  %s335_s2 = smov [#allocation7]  }
  0x2a   :  { %239 = vmatpush3.bf16.msra.mxu0 %v236_v3  ;;  %s203_s11 = sshll.u32 %s335_s2, 4  ;;  %s204_s11 = int_to_ptr.vmem [resolvable:$true] %s203_s11 }
  0x2b   :  { %241 = vmatprep.subr.bf16.mxu0 %v240_v6  ;;  %s302_s12 = scalar_lea.vmem %s204_s11, 256  ;;  %p307_p3 = scmp.lt.s32.totalorder %s204_s11, %s204_s11 }
  0x2c   :  { %p303_p2 = scmp.ne.s32.totalorder %s204_s11, %s302_s12  ;;  %p308_p4 = scmp.lt.s32.totalorder %s302_s12, %s302_s12 }
  0x2e   :  { %243 = vmatpush3.bf16.msra.mxu0 %v240_v6  ;;  %p309_p5 = por %p308_p4, %p307_p3 }
  0x30   :  { %p310_p6 = pnand %p309_p5, %p303_p2 }
  0x31   :  { %234 = vmatmul.mubr.msk.f32.vlgmr.msra.gmra.mrb[0].mxu0 %vm56_vm0, %v44_v7 }
 0x104   :  { %v235_v9 = vpop.f32.mrb[0].mxu0 }
 0x105   :  { %v389_v10 = vadd.f32 %v235_v9, %v216_v8  ;;  %v129_v11 = vpop.f32.mrb[1].mxu0 }
 0x106   :  { %v391_v12 = vadd.f32 %v216_v8, %v129_v11 }
 0x107   :  { %v139_v13 = vmul.f32 0.70710677, %v389_v10 }
 0x108   :  { %v138_v14 = vmul.f32 0.70710677, %v391_v12 }
 0x109   :  { %v145_v15 = vand.u32 2147483647, %v139_v13  ;;  %vm141_vm1 = vcmp.lt.f32.partialorder %v139_v13, 0.0 }
 0x10a   :  { %v144_v16 = vand.u32 2147483647, %v138_v14  ;;  %vm140_vm2 = vcmp.lt.f32.partialorder %v138_v14, 0.0  ;;  %v143_v59 = vsel %vm141_vm1, -1.0, %v334_v58 }
 0x10b   :  { %v147_v17 = vmul.f32 0.3275911, %v145_v15  ;;  %v177_v24 = vsub.f32 0.0, %v145_v15  ;;  %v142_v62 = vsel %vm140_vm2, -1.0, %v334_v58 }
 0x10c   :  { %v146_v18 = vmul.f32 0.3275911, %v144_v16  ;;  %v176_v27 = vsub.f32 0.0, %v144_v16 }
 0x10d   :  { %v149_v19 = vadd.f32 1.0, %v147_v17  ;;  %v179_v30 = vmul.f32 %v177_v24, %v145_v15 }
 0x10e   :  { %v148_v20 = vadd.f32 1.0, %v146_v18  ;;  %v178_v33 = vmul.f32 %v176_v27, %v144_v16 }
 0x10f   :  { %250 = vrcp.f32 %v149_v19  ;;  %v182_v36 = vmul.f32 1.442695, %v179_v30 }
 0x110   :  { %252 = vrcp.f32 %v148_v20  ;;  %v180_v39 = vmul.f32 1.442695, %v178_v33 }
 0x111   :  { %254 = vpow2.f32 %v182_v36 }
 0x112   :  { %256 = vpow2.f32 %v180_v39 }
 0x119   :  { %v251_v21 = vpop.eup %250 }
 0x11a   :  { %v253_v22 = vpop.eup %252  ;;  %v153_v23 = vmul.f32 %v251_v21, %v149_v19 }
 0x11b   :  { %v152_v25 = vmul.f32 %v253_v22, %v148_v20  ;;  %v255_v52 = vpop.eup %254 }
 0x11c   :  { %v155_v26 = vsub.f32 2.0, %v153_v23  ;;  %v257_v54 = vpop.eup %256 }
 0x11d   :  { %v154_v28 = vsub.f32 2.0, %v152_v25 }
 0x11e   :  { %v157_v29 = vmul.f32 %v251_v21, %v155_v26 }
 0x11f   :  { %v156_v31 = vmul.f32 %v253_v22, %v154_v28 }
 0x120   :  { %v159_v32 = vmul.f32 1.0614054, %v157_v29 }
 0x121   :  { %v158_v34 = vmul.f32 1.0614054, %v156_v31 }
 0x122   :  { %v161_v35 = vadd.f32 -1.4531521, %v159_v32 }
 0x123   :  { %v160_v37 = vadd.f32 -1.4531521, %v158_v34 }
 0x124   :  { %v163_v38 = vmul.f32 %v161_v35, %v157_v29 }
 0x125   :  { %v162_v40 = vmul.f32 %v160_v37, %v156_v31 }
 0x126   :  { %v165_v41 = vadd.f32 1.4214138, %v163_v38 }
 0x127   :  { %v164_v42 = vadd.f32 1.4214138, %v162_v40 }
 0x128   :  { %v167_v43 = vmul.f32 %v165_v41, %v157_v29 }
 0x129   :  { %v166_v44 = vmul.f32 %v164_v42, %v156_v31 }
 0x12a   :  { %v169_v45 = vadd.f32 -0.28449672, %v167_v43 }
 0x12b   :  { %v168_v46 = vadd.f32 -0.28449672, %v166_v44 }
 0x12c   :  { %v171_v47 = vmul.f32 %v169_v45, %v157_v29 }
 0x12d   :  { %v170_v48 = vmul.f32 %v168_v46, %v156_v31 }
 0x12e   :  { %v173_v49 = vadd.f32 0.2548296, %v171_v47 }
 0x12f   :  { %v172_v50 = vadd.f32 0.2548296, %v170_v48 }
 0x130   :  { %v175_v51 = vmul.f32 %v173_v49, %v157_v29 }
 0x131   :  { %v174_v53 = vmul.f32 %v172_v50, %v156_v31 }
 0x132   :  { %v185_v55 = vmul.f32 %v255_v52, %v175_v51 }
 0x133   :  { %v184_v56 = vmul.f32 %v257_v54, %v174_v53 }
 0x134   :  { %v187_v57 = vsub.f32 1.0, %v185_v55 }
 0x135   :  { %v186_v60 = vsub.f32 1.0, %v184_v56 }
 0x136   :  { %v189_v61 = vmul.f32 %v187_v57, %v143_v59 }
 0x137   :  { %v188_v63 = vmul.f32 %v186_v60, %v142_v62 }
 0x138   :  { %v191_v0 = vmul.f32 0.5, %v189_v61 }
 0x139   :  { %v190_v1 = vmul.f32 0.5, %v188_v63 }
 0x13a   :  { %v193_v2 = vadd.f32 0.5, %v191_v0 }
 0x13b   :  { %v192_v3 = vadd.f32 0.5, %v190_v1 }
 0x13c   :  { %v195_v4 = vmul.f32 %v193_v2, %v389_v10 }
 0x13d   :  { %v194_v5 = vmul.f32 %v192_v3, %v391_v12 }
 0x13e   :  { %197 = vst [vmem:[#allocation7 + $0x8] sm:$0xff] %v195_v4 }
 0x13f   :  { %196 = vst [vmem:[#allocation7] sm:$0xff] %v194_v5 }
 0x140   :  { %313 = shalt.err (!%p310_p6)
}
 0x141   :  { %s314_s15 = scalar_lea.hbm %s415_s3, 256 }
 0x142   :  { %p315_p7 = scmp.ne.s32.totalorder %s415_s3, %s314_s15  ;;  %p318_p8 = scmp.lt.u32.totalorder %s314_s15, %s415_s3 }
 0x144   :  { %p320_p9 = pnand %p318_p8, %p315_p7 }
 0x146   :  { %323 = shalt.err (!%p320_p9)
}
 0x147   :  { %209 = dma.vmem_to_hbm [thread:$0]  %s204_s11, 256, %s415_s3, [#allocation4], %s331_s22, %s331_s22, %s332_s23  }
 0x148   :  { %328 = dma.done.wait [#allocation4], 256  }
 0x149   :  { %329 = vsyncadd [#allocation4], 4294967040 }
 0x14a   :  { %213 = vsyncpa [#allocation3], 1 }
 0x14b   :  { %214 = vsyncpa [#allocation6], 1 }
 0x14c   :  { %215 = vsyncpa [#allocation4], 1 }

</bundles_post_ra>
